<compile_context>
chip_gen: v7x
topology: tpu7x:2x2x1
jax: 0.10.0
libtpu: 0.0.40
codegen_flags: <defaults>
</compile_context>

<pallas_src>
import jax
import jax.numpy as jnp
from jax.experimental import pallas as pl
from jax.experimental.pallas import tpu as pltpu


def _hbm_copy_kernel(x_hbm_ref, o_hbm_ref, sem):
    """Materializing copy: one HBM->HBM DMA, no VMEM staging, no vector work.

    A single DMA descriptor over a contiguous buffer streams at HBM roofline;
    there is no VMEM footprint, so this is safe for any image size on every
    chip generation (v5e/v6e 128 MiB VMEM, v7x 64 MiB).
    """
    cp = pltpu.make_async_copy(x_hbm_ref, o_hbm_ref, sem)
    cp.start()
    cp.wait()


@jax.jit
def pallas_copy(image):
    """Return a new buffer holding a copy of `image` via a Pallas DMA kernel.

    Only needed when a layer must hand back a distinct, writable buffer; the
    default identity noise layer does NOT call this (it returns its input).
    """
    nbytes = image.size * jnp.dtype(image.dtype).itemsize
    return pl.pallas_call(
        _hbm_copy_kernel,
        out_shape=jax.ShapeDtypeStruct(image.shape, image.dtype),
        in_specs=[pl.BlockSpec(memory_space=pl.ANY)],
        out_specs=pl.BlockSpec(memory_space=pl.ANY),
        scratch_shapes=[pltpu.SemaphoreType.DMA(())],
        cost_estimate=pl.CostEstimate(
            flops=0, transcendentals=0, bytes_accessed=2 * nbytes
        ),
    )(image)


def identity_noise_layer(image_and_cover):
    """Identity noise layer: the noised image == the original encoded image.

    Per the perf review, the copy is elided entirely (zero HBM traffic, zero
    wall time).  Use `pallas_copy(image)` when a materialized, non-aliased
    output buffer is explicitly required.
    """
    image, _cover = image_and_cover
    return image


class Combined:
    """JAX/Pallas port of network.noise_layers.combined.Combined."""

    def __init__(self, layers=None):
        if layers is None:
            layers = [identity_noise_layer]
        self.list = layers
        # Internal key so that, like PyTorch's per-call get_random_int, the
        # chosen layer varies across calls even when no key is supplied.
        self._key = jax.random.PRNGKey(0)

    def __call__(self, image_and_cover, key=None):
        n = len(self.list)
        if n == 1:
            # Only one candidate layer: skip RNG entirely (no host sync).
            return self.list[0](image_and_cover)
        if key is None:
            self._key, key = jax.random.split(self._key)
        # PyTorch's get_random_int([0, n-1]) is inclusive; randint's high is
        # exclusive, so [0, n) matches.  Selection stays on-device and
        # jittable via lax.switch (no blocking int() conversion).
        idx = jax.random.randint(key, (), 0, n)
        return jax.lax.switch(idx, list(self.list), image_and_cover)


if __name__ == "__main__":
    key = jax.random.PRNGKey(0)
    k_img, k_cov = jax.random.split(key)
    batch, channels, spatial = 2, 4, 16
    image = jax.random.normal(
        k_img, (batch, channels, spatial, spatial), dtype=jnp.float32
    )
    cover = jax.random.normal(
        k_cov, (batch, channels, spatial, spatial), dtype=jnp.float32
    )

    # Forward pass of Combined() with the default [Identity()] list:
    # the noised image must equal the original image.
    combined = Combined()
    out = combined((image, cover))
    out = jax.block_until_ready(out)
    assert out.shape == image.shape
    assert out.dtype == image.dtype
    assert bool(jnp.allclose(out, image)), "Identity noise layer mismatch"

    # Exercise the Pallas HBM->HBM DMA copy kernel once (the path used when a
    # materialized, non-aliased output buffer is required) and verify it.
    copied = jax.block_until_ready(pallas_copy(image))
    assert copied.shape == image.shape
    assert copied.dtype == image.dtype
    assert bool(jnp.allclose(copied, image)), "Pallas copy kernel mismatch"

    print("KERNEL_OK")
</pallas_src>

<mosaic_0001>
module attributes {stable_mosaic.version = 11 : i64} {
  func.func @_hbm_copy_kernel(%arg0: memref<2x4x16x16xf32, #tpu.memory_space<any>>, %arg1: memref<2x4x16x16xf32, #tpu.memory_space<any>>, %arg2: memref<!tpu.dma_semaphore, #tpu.memory_space<semaphore_mem>>) attributes {dimension_semantics = [], scalar_prefetch = 0 : i64, scratch_operands = 1 : i64, tpu.core_type = #tpu.core_type<tc>} {
    tpu.enqueue_dma source(%arg0 : memref<2x4x16x16xf32, #tpu.memory_space<any>>) target(%arg1 : memref<2x4x16x16xf32, #tpu.memory_space<any>>) target_semaphore(%arg2 : memref<!tpu.dma_semaphore, #tpu.memory_space<semaphore_mem>>)
    tpu.wait_dma2 semaphore(%arg2 : memref<!tpu.dma_semaphore, #tpu.memory_space<semaphore_mem>>) src(%arg0 : memref<2x4x16x16xf32, #tpu.memory_space<any>>) dst(%arg1 : memref<2x4x16x16xf32, #tpu.memory_space<any>>)
    return
  }
}

</mosaic_0001>

<bundles_post_ra>
// kernel: pallas_copy.1
= control target key start
LH: loop header
LB: loop body
LE: loop exit
PB: predicated region body
PF: predicated region fallthrough
CT: control target
= control target key end

     0   :  { %s36_s6 = smov [#allocation2]   ;;  %s37_s7 = smov [#allocation3]   ;;  %s55_s0 = inlined_call_operand.hbm [shape: f32[2,4,16,16], index: 0, kind: input, shape index: {}]   ;;  %s56_s1 = inlined_call_operand.hbm [shape: f32[2,4,16,16], index: 1, kind: output, shape index: {}]  }
   0x1   :  { %s38_s8 = smov 0  }
   0x2   :  { %18 = dma.general %s55_s0, 2048, %s56_s1, %s36_s6, %s37_s7, [#allocation4], %s38_s8, 0  }
   0x3   :  { %34 = dma.done.wait [#allocation2], 2048 }
   0x4   :  { %35 = vsyncadd [#allocation2], 4294965248 }
   0x5   :  { %24 = vsyncmov [#allocation2] }
   0x8   :  { %s25_s13 = vpop.sfrf %24 }
   0x9   :  { %p30_p0 = scmp.ne.s32.totalorder %s25_s13, 0 }
   0xb   :  { %29 = shalt.err (%p30_p0)  }

</bundles_post_ra>
